<compile_context>
chip_gen: v6e
topology: v6e:2x2x1
jax: 0.10.0
libtpu: 0.0.40
codegen_flags: <defaults>
</compile_context>

<pallas_src>
import functools

import jax
import jax.numpy as jnp
from jax.experimental import pallas as pl
from jax.experimental.pallas import tpu as pltpu


def _round_up(x: int, m: int) -> int:
    return ((x + m - 1) // m) * m


def seq_skip_kernel(x_ref, w1_ref, b1_ref, w2_ref, b2_ref, o_ref):
    x = x_ref[...]                                             # [TN, Dp]
    # Linear(D -> H) + ReLU (MXU matmul, f32 accumulate)
    h = jnp.dot(x, w1_ref[...], preferred_element_type=jnp.float32)
    h = jnp.maximum(h + b1_ref[...], 0.0)                      # [TN, Hp] + [1, Hp]
    # Feed the second MXU matmul in the weight dtype (bf16 path when weights are bf16).
    h = h.astype(w2_ref.dtype)
    # Linear(H -> D)
    y = jnp.dot(h, w2_ref[...], preferred_element_type=jnp.float32)
    y = y + b2_ref[...]                                        # [TN, Dp] + [1, Dp]
    # dropout(p=0) == identity (inference / p=0 path of nn.Dropout).
    # TODO(synk): training-mode dropout (p>0) would need a scalar-prefetched seed +
    #             pltpu.prng_seed / pltpu.prng_random_bits mask here.
    # Residual skip in f32, single downcast at the end.
    o_ref[...] = (y + x.astype(jnp.float32)).astype(o_ref.dtype)


@functools.partial(jax.jit, static_argnames=("tn",))
def sequential_skip(x, w1, b1, w2, b2, *, tn: int = 256):
    """x: [N, D]; w1: [D, H]; b1: [H]; w2: [H, D]; b2: [D]. Returns [N, D]."""
    N, D = x.shape
    H = w1.shape[1]
    dtype = x.dtype
    itemsize = jnp.dtype(dtype).itemsize

    # Lane-dense padding (multiples of 128 on the last dim of every operand) and
    # sublane-aligned token tiles (multiple of 8 rows).
    Dp = _round_up(D, 128)
    Hp = _round_up(H, 128)
    tn = min(tn, _round_up(N, 8))          # don't over-tile tiny problems
    Np = _round_up(N, tn)
    grid = (Np // tn,)

    # Zero padding is inert: padded x cols are 0, padded weight rows/cols and biases
    # are 0, so padded outputs are 0 and we slice them away at the end.
    xp = jnp.pad(x, ((0, Np - N), (0, Dp - D)))
    w1p = jnp.pad(w1, ((0, Dp - D), (0, Hp - H)))
    b1p = jnp.pad(b1, ((0, Hp - H),)).reshape(1, Hp)
    w2p = jnp.pad(w2, ((0, Hp - H), (0, Dp - D)))
    b2p = jnp.pad(b2, ((0, Dp - D),)).reshape(1, Dp)

    # VMEM budget: resident weights/biases + double-buffered x/out tiles + f32
    # intermediates for one tile. Leave ~1.5x headroom; floor at the 32 MiB scoped
    # default, cap well under v7x's 64 MiB physical.
    resident = itemsize * (Dp * Hp + Hp * Dp + Hp + Dp)
    per_tile = itemsize * (2 * tn * Dp + 2 * tn * Dp) + 4 * (tn * Hp + tn * Dp)
    vmem_limit = int(min(60 * 2**20, max(32 * 2**20, 1.5 * (resident + per_tile))))

    cost = pl.CostEstimate(
        flops=4 * N * D * H,                        # two N x D x H / N x H x D matmuls
        transcendentals=0,
        bytes_accessed=itemsize * (N * D * 2 + D * H * 2 + H + D),
    )

    out = pl.pallas_call(
        seq_skip_kernel,
        out_shape=jax.ShapeDtypeStruct((Np, Dp), dtype),
        grid_spec=pl.GridSpec(
            grid=grid,
            in_specs=[
                pl.BlockSpec((tn, Dp), lambda i: (i, 0)),   # x tile: pipelined over N
                pl.BlockSpec((Dp, Hp), lambda i: (0, 0)),   # W1: VMEM-resident
                pl.BlockSpec((1, Hp), lambda i: (0, 0)),    # b1: VMEM-resident
                pl.BlockSpec((Hp, Dp), lambda i: (0, 0)),   # W2: VMEM-resident
                pl.BlockSpec((1, Dp), lambda i: (0, 0)),    # b2: VMEM-resident
            ],
            out_specs=pl.BlockSpec((tn, Dp), lambda i: (i, 0)),
        ),
        compiler_params=pltpu.CompilerParams(
            dimension_semantics=("parallel",),              # independent token tiles
            vmem_limit_bytes=vmem_limit,
        ),
        cost_estimate=cost,
    )(xp, w1p, b1p, w2p, b2p)

    return out[:N, :D]
    # TODO(synk): if D*H grows past VMEM residency (differs per chip: 64 MiB on v7x vs
    #             128 MiB on v5e/v6e), add an H-reduction grid axis ("arbitrary", last)
    #             with a VMEM accumulator + pl.when init/finalize instead of keeping
    #             both weight matrices resident.


if __name__ == "__main__":
    # Small shapes: batch=2, seq=8, d_model=32, hidden=128  -> tokens N = 16
    B, S, D, Hdim = 2, 8, 32, 128
    key = jax.random.PRNGKey(0)
    kx, kw1, kb1, kw2, kb2 = jax.random.split(key, 5)

    x_bsd = jax.random.normal(kx, (B, S, D), dtype=jnp.float32)

    # Deterministic parameter init (shapes as nn.Linear would give; stored [in, out]).
    w1 = jax.random.normal(kw1, (D, Hdim), dtype=jnp.float32) * 0.05
    b1 = jax.random.normal(kb1, (Hdim,), dtype=jnp.float32) * 0.05
    w2 = jax.random.normal(kw2, (Hdim, D), dtype=jnp.float32) * 0.05
    b2 = jax.random.normal(kb2, (D,), dtype=jnp.float32) * 0.05

    x_flat = x_bsd.reshape(B * S, D)                 # glue: flatten tokens
    out_flat = sequential_skip(x_flat, w1, b1, w2, b2)
    out = out_flat.reshape(B, S, D)
    jax.block_until_ready(out)

    # Reference check in plain JAX (same math).
    ref = jnp.maximum(x_flat @ w1 + b1, 0.0) @ w2 + b2 + x_flat
    assert jnp.allclose(out_flat, ref, atol=1e-4, rtol=1e-4)

    print("KERNEL_OK")
</pallas_src>

<mosaic_0001>
module attributes {stable_mosaic.version = 11 : i64} {
  func.func @seq_skip_kernel(%arg0: i32, %arg1: memref<16x128xf32, #tpu.memory_space<vmem>>, %arg2: memref<128x128xf32, #tpu.memory_space<vmem>>, %arg3: memref<1x128xf32, #tpu.memory_space<vmem>>, %arg4: memref<128x128xf32, #tpu.memory_space<vmem>>, %arg5: memref<1x128xf32, #tpu.memory_space<vmem>>, %arg6: memref<16x128xf32, #tpu.memory_space<vmem>>) attributes {dimension_semantics = [#tpu.dimension_semantics<parallel>], iteration_bounds = array<i64: 1>, scalar_prefetch = 0 : i64, scratch_operands = 0 : i64, tpu.core_type = #tpu.core_type<tc>, window_params = [{transform_indices = @transform_0, window_bounds = array<i64: 16, 128>}, {pipeline_mode = #tpu.pipeline_mode<synchronous>, transform_indices = @transform_1, window_bounds = array<i64: 128, 128>}, {pipeline_mode = #tpu.pipeline_mode<synchronous>, transform_indices = @transform_2, window_bounds = array<i64: 1, 128>}, {pipeline_mode = #tpu.pipeline_mode<synchronous>, transform_indices = @transform_3, window_bounds = array<i64: 128, 128>}, {pipeline_mode = #tpu.pipeline_mode<synchronous>, transform_indices = @transform_4, window_bounds = array<i64: 1, 128>}, {transform_indices = @transform_5, window_bounds = array<i64: 16, 128>}]} {
    %c0 = arith.constant 0 : index
    %c0_0 = arith.constant 0 : index
    %0 = vector.load %arg1[%c0, %c0_0] : memref<16x128xf32, #tpu.memory_space<vmem>>, vector<16x128xf32>
    %c0_1 = arith.constant 0 : index
    %c0_2 = arith.constant 0 : index
    %1 = vector.load %arg2[%c0_1, %c0_2] : memref<128x128xf32, #tpu.memory_space<vmem>>, vector<128x128xf32>
    %cst = arith.constant dense<0.000000e+00> : vector<16x128xf32>
    %2 = tpu.matmul %0, %1, %cst {dimension_numbers = #tpu.dot_dimension_numbers<[1], [0], [0], [1], [0, 0, 1, 1], [], []>} : vector<16x128xf32>, vector<128x128xf32>, vector<16x128xf32> -> vector<16x128xf32>
    %c0_3 = arith.constant 0 : index
    %c0_4 = arith.constant 0 : index
    %3 = vector.load %arg3[%c0_3, %c0_4] : memref<1x128xf32, #tpu.memory_space<vmem>>, vector<1x128xf32>
    %4 = vector.broadcast %3 : vector<1x128xf32> to vector<16x128xf32>
    %5 = arith.addf %2, %4 : vector<16x128xf32>
    %cst_5 = arith.constant 0.000000e+00 : f32
    %6 = vector.broadcast %cst_5 : f32 to vector<16x128xf32>
    %7 = arith.maximumf %5, %6 : vector<16x128xf32>
    %c0_6 = arith.constant 0 : index
    %c0_7 = arith.constant 0 : index
    %8 = vector.load %arg4[%c0_6, %c0_7] : memref<128x128xf32, #tpu.memory_space<vmem>>, vector<128x128xf32>
    %cst_8 = arith.constant dense<0.000000e+00> : vector<16x128xf32>
    %9 = tpu.matmul %7, %8, %cst_8 {dimension_numbers = #tpu.dot_dimension_numbers<[1], [0], [0], [1], [0, 0, 1, 1], [], []>} : vector<16x128xf32>, vector<128x128xf32>, vector<16x128xf32> -> vector<16x128xf32>
    %c0_9 = arith.constant 0 : index
    %c0_10 = arith.constant 0 : index
    %10 = vector.load %arg5[%c0_9, %c0_10] : memref<1x128xf32, #tpu.memory_space<vmem>>, vector<1x128xf32>
    %11 = vector.broadcast %10 : vector<1x128xf32> to vector<16x128xf32>
    %12 = arith.addf %9, %11 : vector<16x128xf32>
    %13 = arith.addf %12, %0 : vector<16x128xf32>
    %c0_11 = arith.constant 0 : index
    %c0_12 = arith.constant 0 : index
    %14 = vector.load %arg6[%c0_11, %c0_12] : memref<16x128xf32, #tpu.memory_space<vmem>>, vector<16x128xf32>
    tpu.vector_store %arg6[%c0_11, %c0_12], %13 {strides = array<i32>} : memref<16x128xf32, #tpu.memory_space<vmem>>, vector<16x128xf32>,
    return
  }
  func.func @transform_0(%arg0: i32) -> (i32, i32) {
    %c0_i32 = arith.constant 0 : i32
    %c0_i32_0 = arith.constant 0 : i32
    return %arg0, %c0_i32 : i32, i32
  }
  func.func @transform_1(%arg0: i32) -> (i32, i32) {
    %c0_i32 = arith.constant 0 : i32
    %c0_i32_0 = arith.constant 0 : i32
    %c0_i32_1 = arith.constant 0 : i32
    return %c0_i32, %c0_i32_0 : i32, i32
  }
  func.func @transform_2(%arg0: i32) -> (i32, i32) {
    %c0_i32 = arith.constant 0 : i32
    %c0_i32_0 = arith.constant 0 : i32
    %c0_i32_1 = arith.constant 0 : i32
    return %c0_i32, %c0_i32_0 : i32, i32
  }
  func.func @transform_3(%arg0: i32) -> (i32, i32) {
    %c0_i32 = arith.constant 0 : i32
    %c0_i32_0 = arith.constant 0 : i32
    %c0_i32_1 = arith.constant 0 : i32
    return %c0_i32, %c0_i32_0 : i32, i32
  }
  func.func @transform_4(%arg0: i32) -> (i32, i32) {
    %c0_i32 = arith.constant 0 : i32
    %c0_i32_0 = arith.constant 0 : i32
    %c0_i32_1 = arith.constant 0 : i32
    return %c0_i32, %c0_i32_0 : i32, i32
  }
  func.func @transform_5(%arg0: i32) -> (i32, i32) {
    %c0_i32 = arith.constant 0 : i32
    %c0_i32_0 = arith.constant 0 : i32
    return %arg0, %c0_i32 : i32, i32
  }
}

</mosaic_0001>

<bundles_post_ra>
// kernel: sequential_skip.1
= control target key start
LH: loop header
LB: loop body
LE: loop exit
PB: predicated region body
PF: predicated region fallthrough
CT: control target
= control target key end

     0   :  { %s522_s0 = inlined_call_operand.vmem [shape: f32[16,128], index: 0, kind: input, shape index: {}]   ;;  %s523_s1 = inlined_call_operand.vmem [shape: f32[128,128], index: 1, kind: input, shape index: {}]   ;;  %s524_s2 = inlined_call_operand.vmem [shape: f32[1,128], index: 2, kind: input, shape index: {}]   ;;  %s525_s3 = inlined_call_operand.vmem [shape: f32[128,128], index: 3, kind: input, shape index: {}]   ;;  %s526_s4 = inlined_call_operand.vmem [shape: f32[1,128], index: 4, kind: input, shape index: {}]   ;;  %s527_s5 = inlined_call_operand.hbm [shape: f32[16,128], index: 5, kind: output, shape index: {}]  }
   0x1   :  { %v38_v0 = vld [vmem:[%s523_s1 + $0x78] sm:$0xff]  ;;  %v37_v1 = vld [vmem:[%s523_s1 + $0x70] sm:$0xff]  ;;  %v36_v2 = vld [vmem:[%s523_s1 + $0x68] sm:$0xff] }
   0x2   :  { %279 = vmatprep.subr.mxu0 %v38_v0  ;;  %v35_v3 = vld [vmem:[%s523_s1 + $0x60] sm:$0xff]  ;;  %v34_v5 = vld [vmem:[%s523_s1 + $0x58] sm:$0xff]  ;;  %v137_v7 = vld [vmem:[%s525_s3 + $0x70] sm:$0xff] }
   0x3   :  { %280 = vmatpush3.msra.mxu0 %v38_v0  ;;  %v422_v4 = vld [vmem:[%s522_s0] sm:$0xff]  ;;  %v138_v6 = vld [vmem:[%s525_s3 + $0x78] sm:$0xff]  ;;  %v33_v8 = vld [vmem:[%s523_s1 + $0x50] sm:$0xff] }
   0x4   :  { %281 = vmatprep.subr.mxu0 %v37_v1  ;;  %311 = vmatprep.mubr.f32.mxu0 %v422_v4  ;;  %v136_v9 = vld [vmem:[%s525_s3 + $0x68] sm:$0xff]  ;;  %v135_v11 = vld [vmem:[%s525_s3 + $0x60] sm:$0xff] }
   0x5   :  { %282 = vmatpush3.msra.mxu0 %v37_v1  ;;  %314 = vmatprep.subr.mxu1 %v138_v6  ;;  %v32_v10 = vld [vmem:[%s523_s1 + $0x48] sm:$0xff] }
   0x6   :  { %283 = vmatprep.subr.mxu0 %v36_v2  ;;  %315 = vmatpush3.msra.mxu1 %v138_v6 }
   0x7   :  { %284 = vmatpush3.msra.mxu0 %v36_v2  ;;  %316 = vmatprep.subr.mxu1 %v137_v7 }
   0x8   :  { %285 = vmatprep.subr.mxu0 %v35_v3  ;;  %317 = vmatpush3.msra.mxu1 %v137_v7 }
   0x9   :  { %286 = vmatpush3.msra.mxu0 %v35_v3 }
   0xa   :  { %287 = vmatprep.subr.mxu0 %v34_v5 }
   0xb   :  { %288 = vmatpush3.msra.mxu0 %v34_v5 }
   0xc   :  { %10 = vsyncpa [#allocation3], 0  ;;  %289 = vmatprep.subr.mxu0 %v33_v8  ;;  %318 = vmatprep.subr.mxu1 %v136_v9  ;;  %v31_v12 = vld [vmem:[%s523_s1 + $0x40] sm:$0xff]  ;;  %v134_v13 = vld [vmem:[%s525_s3 + $0x58] sm:$0xff] }
   0xd   :  { %290 = vmatpush3.msra.mxu0 %v33_v8  ;;  %319 = vmatpush3.msra.mxu1 %v136_v9  ;;  %v30_v14 = vld [vmem:[%s523_s1 + $0x38] sm:$0xff]  ;;  %v133_v15 = vld [vmem:[%s525_s3 + $0x50] sm:$0xff]  ;;  %v132_v17 = vld [vmem:[%s525_s3 + $0x48] sm:$0xff] }
   0xe   :  { %291 = vmatprep.subr.mxu0 %v32_v10  ;;  %320 = vmatprep.subr.mxu1 %v135_v11  ;;  %v29_v16 = vld [vmem:[%s523_s1 + $0x30] sm:$0xff]  ;;  %v28_v18 = vld [vmem:[%s523_s1 + $0x28] sm:$0xff]  ;;  %v131_v19 = vld [vmem:[%s525_s3 + $0x40] sm:$0xff] }
   0xf   :  { %292 = vmatpush3.msra.mxu0 %v32_v10  ;;  %321 = vmatpush3.msra.mxu1 %v135_v11  ;;  %v27_v20 = vld [vmem:[%s523_s1 + $0x20] sm:$0xff]  ;;  %v130_v21 = vld [vmem:[%s525_s3 + $0x38] sm:$0xff]  ;;  %v129_v23 = vld [vmem:[%s525_s3 + $0x30] sm:$0xff] }
  0x10   :  { %293 = vmatprep.subr.mxu0 %v31_v12  ;;  %322 = vmatprep.subr.mxu1 %v134_v13  ;;  %v26_v22 = vld [vmem:[%s523_s1 + $0x18] sm:$0xff]  ;;  %v25_v24 = vld [vmem:[%s523_s1 + $0x10] sm:$0xff]  ;;  %v128_v25 = vld [vmem:[%s525_s3 + $0x28] sm:$0xff] }
  0x11   :  { %294 = vmatpush3.msra.mxu0 %v31_v12  ;;  %323 = vmatpush3.msra.mxu1 %v134_v13  ;;  %v24_v26 = vld [vmem:[%s523_s1 + $0x8] sm:$0xff]  ;;  %v127_v27 = vld [vmem:[%s525_s3 + $0x20] sm:$0xff]  ;;  %v126_v30 = vld [vmem:[%s525_s3 + $0x18] sm:$0xff] }
  0x12   :  { %295 = vmatprep.subr.mxu0 %v30_v14  ;;  %324 = vmatprep.subr.mxu1 %v133_v15  ;;  %v23_v28 = vld [vmem:[%s523_s1] sm:$0xff]  ;;  %v22_v29 = vld [vmem:[%s522_s0 + $0x8] sm:$0xff]  ;;  %v125_v31 = vld [vmem:[%s525_s3 + $0x10] sm:$0xff] }
  0x13   :  { %296 = vmatpush3.msra.mxu0 %v30_v14  ;;  %325 = vmatpush3.msra.mxu1 %v133_v15  ;;  %v124_v32 = vld [vmem:[%s525_s3 + $0x8] sm:$0xff]  ;;  %v123_v33 = vld [vmem:[%s525_s3] sm:$0xff]  ;;  %s374_s3 = smov [#allocation2]  }
  0x14   :  { %297 = vmatprep.subr.mxu0 %v29_v16  ;;  %326 = vmatprep.subr.mxu1 %v132_v17  ;;  %v241_v34 = vld [vmem:[%s524_s2] ss:$0 sm:$0xff]  ;;  %s230_s13 = sshll.u32 %s374_s3, 4  ;;  %s231_s13 = int_to_ptr.vmem [resolvable:$true] %s230_s13 }
  0x15   :  { %298 = vmatpush3.msra.mxu0 %v29_v16  ;;  %327 = vmatpush3.msra.mxu1 %v132_v17  ;;  %v242_v41 = vld [vmem:[%s526_s4] ss:$0 sm:$0xff]  ;;  %s352_s2 = scalar_lea.vmem %s231_s13, 256  ;;  %p357_p1 = scmp.lt.s32.totalorder %s231_s13, %s231_s13 }
  0x16   :  { %299 = vmatprep.subr.mxu0 %v28_v18  ;;  %328 = vmatprep.subr.mxu1 %v131_v19  ;;  %p353_p0 = scmp.ne.s32.totalorder %s231_s13, %s352_s2  ;;  %p358_p2 = scmp.lt.s32.totalorder %s352_s2, %s352_s2 }
  0x17   :  { %300 = vmatpush3.msra.mxu0 %v28_v18  ;;  %329 = vmatpush3.msra.mxu1 %v131_v19 }
  0x18   :  { %301 = vmatprep.subr.mxu0 %v27_v20  ;;  %330 = vmatprep.subr.mxu1 %v130_v21  ;;  %p359_p3 = por %p358_p2, %p357_p1 }
  0x19   :  { %302 = vmatpush3.msra.mxu0 %v27_v20  ;;  %331 = vmatpush3.msra.mxu1 %v130_v21 }
  0x1a   :  { %303 = vmatprep.subr.mxu0 %v26_v22  ;;  %332 = vmatprep.subr.mxu1 %v129_v23  ;;  %p360_p4 = pnand %p359_p3, %p353_p0 }
  0x1b   :  { %304 = vmatpush3.msra.mxu0 %v26_v22  ;;  %333 = vmatpush3.msra.mxu1 %v129_v23 }
  0x1c   :  { %305 = vmatprep.subr.mxu0 %v25_v24  ;;  %334 = vmatprep.subr.mxu1 %v128_v25 }
  0x1d   :  { %306 = vmatpush3.msra.mxu0 %v25_v24  ;;  %335 = vmatpush3.msra.mxu1 %v128_v25 }
  0x1e   :  { %307 = vmatprep.subr.mxu0 %v24_v26  ;;  %336 = vmatprep.subr.mxu1 %v127_v27 }
  0x1f   :  { %308 = vmatpush3.msra.mxu0 %v24_v26  ;;  %337 = vmatpush3.msra.mxu1 %v127_v27 }
  0x20   :  { %309 = vmatprep.subr.mxu0 %v23_v28  ;;  %338 = vmatprep.subr.mxu1 %v126_v30 }
  0x21   :  { %310 = vmatpush3.msra.mxu0 %v23_v28  ;;  %339 = vmatpush3.msra.mxu1 %v126_v30 }
  0x22   :  { %312 = vmatmul.mubr.f32.vlgmr.msra.gmra.mxu0 %v22_v29  ;;  %340 = vmatprep.subr.mxu1 %v125_v31 }
  0x23   :  { %341 = vmatpush3.msra.mxu1 %v125_v31 }
  0x24   :  { %342 = vmatprep.subr.mxu1 %v124_v32 }
  0x25   :  { %343 = vmatpush3.msra.mxu1 %v124_v32 }
  0x26   :  { %344 = vmatprep.subr.mxu1 %v123_v33 }
  0x27   :  { %345 = vmatpush3.msra.mxu1 %v123_v33 }
  0xe2   :  { %v313_v35 = vpop.f32.mrf.mxu0 }
  0xe3   :  { %v118_v36 = vadd.f32 %v313_v35, %v241_v34 }
  0xe4   :  { %v112_v37 = vpop.f32.mrf.mxu0 }
  0xe5   :  { %v113_v38 = vadd.f32 %v241_v34, %v112_v37  ;;  %v122_v40 = vmax.f32 %v118_v36, 0.0 }
  0xe7   :  { %v121_v39 = vmax.f32 %v113_v38, 0.0 }
  0xe9   :  { %346 = vmatprep.mubr.f32.mxu1 %v121_v39 }
  0xea   :  { %347 = vmatmul.mubr.f32.vlgmr.msra.gmra.mxu1 %v122_v40 }
 0x1aa   :  { %v348_v42 = vpop.f32.mrf.mxu1 }
 0x1ab   :  { %v218_v43 = vadd.f32 %v348_v42, %v242_v41 }
 0x1ac   :  { %v212_v44 = vpop.f32.mrf.mxu1 }
 0x1ad   :  { %v222_v45 = vadd.f32 %v218_v43, %v22_v29  ;;  %v213_v46 = vadd.f32 %v242_v41, %v212_v44 }
 0x1af   :  { %224 = vst [vmem:[#allocation2 + $0x8] sm:$0xff] %v222_v45  ;;  %v221_v47 = vadd.f32 %v213_v46, %v422_v4 }
 0x1b1   :  { %223 = vst [vmem:[#allocation2] sm:$0xff] %v221_v47 }
 0x1b2   :  { %363 = shalt.err (!%p360_p4)
}
 0x1b3   :  { %s375_s4 = smov 128   ;;  %s376_s14 = smov 8  }
 0x1b4   :  { %236 = dma.vmem_to_hbm [thread:$0]  %s231_s13, 256, %s527_s5, [#allocation3], %s375_s4, %s375_s4, %s376_s14  }
 0x1b5   :  { %372 = dma.done.wait [#allocation3], 256  }
 0x1b6   :  { %373 = vsyncadd [#allocation3], 4294967040 }
 0x1b7   :  { %240 = vsyncpa [#allocation3], 1 }

</bundles_post_ra>
